<compile_context>
chip_gen: v7x
topology: tpu7x:2x2x1
jax: 0.10.0
libtpu: 0.0.40
codegen_flags: <defaults>
</compile_context>

<pallas_src>
import math
from functools import lru_cache

import numpy as np
import jax
import jax.numpy as jnp
from jax.experimental import pallas as pl
from jax.experimental.pallas import tpu as pltpu


# ---------------------------------------------------------------------------
# Filter construction (equivalent to pywt.Wavelet('db1') + prep_filt_afb2d,
# which flips the filters because torch conv2d is cross-correlation).
# ---------------------------------------------------------------------------
_C = 1.0 / math.sqrt(2.0)
_H0_FLIPPED = np.array([_C, _C], dtype=np.float64)    # flipped dec_lo
_H1_FLIPPED = np.array([_C, -_C], dtype=np.float64)   # flipped dec_hi


def _downsample_matrix(h_flipped, n):
    """Matrix M (n, n_out): (x @ M)[k] = stride-2 zero-padded cross-correlation
    output of lowlevel.afb1d along an axis of even length n."""
    L = len(h_flipped)
    outsize = (n + L - 1) // 2
    p = 2 * (outsize - 1) - n + L
    assert p % 2 == 0, "odd-length inputs not supported"
    pad = p // 2
    M = np.zeros((n, outsize), dtype=np.float32)
    k = np.arange(outsize)
    for t in range(L):  # L == 2 for Haar
        i = 2 * k + t - pad
        valid = (i >= 0) & (i < n)
        M[i[valid], k[valid]] = h_flipped[t]
    return M


@lru_cache(maxsize=None)
def _fused_filters_np(n):
    """Fused analysis matrices for an (even) axis length n:
       Dw  (n, n): columns [lo | hi]  (right-multiply, filters along width)
       Dht (n, n): rows    [lo ; hi]  (left-multiply,  filters along height)"""
    lo = _downsample_matrix(_H0_FLIPPED, n)
    hi = _downsample_matrix(_H1_FLIPPED, n)
    dw = np.concatenate([lo, hi], axis=1).astype(np.float32)
    dht = np.concatenate([lo.T, hi.T], axis=0).astype(np.float32)
    return dw, dht


# ---------------------------------------------------------------------------
# Generation-aware sizing.
# ---------------------------------------------------------------------------
def _vmem_capacity_bytes():
    try:
        info = pltpu.get_tpu_info()
        v = getattr(info, "vmem_capacity_bytes", None)
        if v:
            return int(v)
    except Exception:
        pass
    return 64 * 1024 * 1024  # conservative (v7x-sized) fallback


def _choose_blocks(nc, h, w, itemsize, budget, big_vmem):
    """Pick (cb, th, tw): channel block, H tile, W tile."""
    # Width tile: cap the dense (tw, tw) width filter and MXU flops at 256.
    # Haar is halo-free (length-2 filter, stride 2) -> width tiles independent.
    if w > 512 and w % 256 == 0:
        tw = 256
    else:
        tw = w
        # TODO(synk): very large W with no 256-divisor keeps a dense (W, W) filter.

    # Height tile: take the full plane when it fits, otherwise the largest
    # multiple of 32 dividing H that fits the budget, capped at 256.
    # (Multiples of 32 keep th2 a multiple of 8 and cover sublane packing for
    #  f32 / bf16 / int8, so the fused slab reshape stays layout-preserving.)
    row_bytes = tw * itemsize
    if h <= 512 and h * row_bytes <= budget:
        th = h
    else:
        cands = [t for t in range(32, 257, 32)
                 if t <= h and h % t == 0 and t * row_bytes <= budget]
        th = max(cands) if cands else h
        # TODO(synk): fallback th = h builds a dense (H, H) height filter.

    # Channel block: fill the budget with whole channels. The cap keeps the
    # static per-channel unroll inside the kernel (and compile time) sane.
    blk = max(th * tw * itemsize, 1)
    cb_cap = 64 if big_vmem else 32
    cb_max = int(min(max(budget // blk, 1), cb_cap, nc))
    cb = max(d for d in range(1, cb_max + 1) if nc % d == 0)
    return cb, th, tw


# ---------------------------------------------------------------------------
# Pallas kernel: block of CB channels x TH rows x TW cols -> LL + (3, th2, tw2).
# ---------------------------------------------------------------------------
def _dwt_kernel(x_ref, dw_ref, dht_ref, yl_ref, yh_ref):
    cb, th, tw = x_ref.shape
    th2, tw2 = th // 2, tw // 2
    in_dtype = x_ref.dtype
    dw = dw_ref[...]           # (tw, tw)  columns: [lo | hi]  (width filters)
    dht = dht_ref[...]         # (th, th)  rows:    [lo ; hi]  (height filters)

    # Sublane packing: native tile is (8*packing, 128) for this dtype.
    packing = max(1, 4 // jnp.dtype(in_dtype).itemsize)
    fused_ok = (th % (8 * packing) == 0)

    yw_all = None
    if fused_ok:
        # Fused width pass: ONE big MXU matmul over the whole channel block
        # (layout-preserving reshape since th is a multiple of the sublane tile).
        x2 = x_ref[...].reshape(cb * th, tw)
        yw_all = jnp.dot(x2, dw, preferred_element_type=jnp.float32)   # f32

    for c in range(cb):  # static unroll; LLO scheduler pipelines the matmuls
        if yw_all is not None:
            # Downcast only this channel's slice right before the height matmul.
            yw = yw_all[c * th:(c + 1) * th, :].astype(in_dtype)
        else:
            yw = jnp.dot(x_ref[c], dw,
                         preferred_element_type=jnp.float32).astype(in_dtype)
        # Height pass: quadrant result (rows: [Hlo ; Hhi], cols: [Wlo | Whi]).
        z = jnp.dot(dht, yw, preferred_element_type=jnp.float32)       # (th, tw)
        # Direct slice-stores: no concatenate, no wrapper transpose needed.
        yl_ref[c]    = z[:th2, :tw2].astype(yl_ref.dtype)   # LL
        yh_ref[c, 0] = z[th2:, :tw2].astype(yh_ref.dtype)   # LH (Wlo, Hhi)
        yh_ref[c, 1] = z[:th2, tw2:].astype(yh_ref.dtype)   # HL (Whi, Hlo)
        yh_ref[c, 2] = z[th2:, tw2:].astype(yh_ref.dtype)   # HH (Whi, Hhi)


# ---------------------------------------------------------------------------
# One decomposition level.
# ---------------------------------------------------------------------------
def _dwt_level(x):
    N, C, H, W = x.shape
    assert H % 2 == 0 and W % 2 == 0, "even spatial dims required"
    # TODO(synk): odd H/W (extra zero-pad row/col as in pytorch_wavelets) not implemented.
    nc = N * C
    H2, W2 = H // 2, W // 2
    dtype = x.dtype
    itemsize = jnp.dtype(dtype).itemsize

    vmem_cap = _vmem_capacity_bytes()
    big_vmem = vmem_cap >= 100 * 1024 * 1024          # v5e/v6e (128 MiB) vs v7x (64 MiB)
    budget = (8 if big_vmem else 3) * 1024 * 1024     # target bytes for one x block

    cb, th, tw = _choose_blocks(nc, H, W, itemsize, budget, big_vmem)
    th2, tw2 = th // 2, tw // 2

    dw = jnp.asarray(_fused_filters_np(tw)[0], dtype=dtype)
    dht = jnp.asarray(_fused_filters_np(th)[1], dtype=dtype)

    x_flat = x.reshape(nc, H, W)

    # VMEM budget: double-buffered in/out blocks + filters + f32 intermediates.
    blk_in = cb * th * tw * itemsize
    blk_out = 4 * cb * th2 * tw2 * itemsize
    filt = (tw * tw + th * th) * itemsize
    scratch = 2 * cb * th * tw * 4
    need = 2 * (blk_in + blk_out + filt) + scratch
    vmem_limit = int(min(max(need, 16 * 1024 * 1024), int(0.7 * vmem_cap)))

    yl_flat, yh_flat = pl.pallas_call(
        _dwt_kernel,
        grid=(nc // cb, H // th, W // tw),
        in_specs=[
            pl.BlockSpec((cb, th, tw), lambda i, j, k: (i, j, k)),
            pl.BlockSpec((tw, tw), lambda i, j, k: (0, 0)),
            pl.BlockSpec((th, th), lambda i, j, k: (0, 0)),
        ],
        out_specs=(
            pl.BlockSpec((cb, th2, tw2), lambda i, j, k: (i, j, k)),
            pl.BlockSpec((cb, 3, th2, tw2), lambda i, j, k: (i, 0, j, k)),
        ),
        out_shape=(
            jax.ShapeDtypeStruct((nc, H2, W2), dtype),
            jax.ShapeDtypeStruct((nc, 3, H2, W2), dtype),
        ),
        compiler_params=pltpu.CompilerParams(
            dimension_semantics=("parallel", "parallel", "parallel"),
            vmem_limit_bytes=vmem_limit,
        ),
    )(x_flat, dw, dht)

    yl = yl_flat.reshape(N, C, H2, W2)
    yh = yh_flat.reshape(N, C, 3, H2, W2)   # pure reshape: no HBM transpose pass
    return yl, yh


# ---------------------------------------------------------------------------
# Module forward: returns (yl, yh) with yh a list of length J.
# ---------------------------------------------------------------------------
def dwt_forward(x, J=1):
    yh = []
    ll = x
    for _ in range(J):
        ll, high = _dwt_level(ll)
        yh.append(high)
    return ll, yh


# ---------------------------------------------------------------------------
# Pure-JAX reference (Haar, zero mode, even H/W) for validation.
# ---------------------------------------------------------------------------
def _ref_dwt_haar(x):
    x00 = x[..., 0::2, 0::2]
    x01 = x[..., 0::2, 1::2]
    x10 = x[..., 1::2, 0::2]
    x11 = x[..., 1::2, 1::2]
    ll = 0.5 * (x00 + x01 + x10 + x11)
    lh = 0.5 * (x00 + x01 - x10 - x11)   # width-low,  height-high
    hl = 0.5 * (x00 - x01 + x10 - x11)   # width-high, height-low
    hh = 0.5 * (x00 - x01 - x10 + x11)   # width-high, height-high
    return ll, jnp.stack([lh, hl, hh], axis=2)


if __name__ == "__main__":
    key = jax.random.PRNGKey(0)
    x = jax.random.normal(key, (2, 4, 16, 16), dtype=jnp.float32)

    # J = 1, f32
    yl, yh = dwt_forward(x, J=1)
    yl = jax.block_until_ready(yl)
    yh0 = jax.block_until_ready(yh[0])
    assert yl.shape == (2, 4, 8, 8)
    assert yh0.shape == (2, 4, 3, 8, 8)
    ll_ref, high_ref = _ref_dwt_haar(x)
    np.testing.assert_allclose(np.asarray(yl), np.asarray(ll_ref), rtol=1e-5, atol=1e-5)
    np.testing.assert_allclose(np.asarray(yh0), np.asarray(high_ref), rtol=1e-5, atol=1e-5)

    # J = 2, f32 (second level runs on the level-1 LL)
    yl2, yh2 = dwt_forward(x, J=2)
    yl2 = jax.block_until_ready(yl2)
    ll2_ref, high2_ref = _ref_dwt_haar(ll_ref)
    np.testing.assert_allclose(np.asarray(yl2), np.asarray(ll2_ref), rtol=1e-5, atol=1e-5)
    np.testing.assert_allclose(np.asarray(yh2[0]), np.asarray(high_ref), rtol=1e-5, atol=1e-5)
    np.testing.assert_allclose(np.asarray(yh2[1]), np.asarray(high2_ref), rtol=1e-5, atol=1e-5)

    # bf16 smoke test (loose tolerance: bf16 MXU path + bf16 outputs).
    xb = x.astype(jnp.bfloat16)
    ylb, yhb = dwt_forward(xb, J=1)
    ylb = jax.block_until_ready(ylb)
    llb_ref, highb_ref = _ref_dwt_haar(xb.astype(jnp.float32))
    np.testing.assert_allclose(np.asarray(ylb.astype(jnp.float32)), np.asarray(llb_ref),
                               rtol=5e-2, atol=1e-1)
    np.testing.assert_allclose(np.asarray(yhb[0].astype(jnp.float32)), np.asarray(highb_ref),
                               rtol=5e-2, atol=1e-1)

    print("KERNEL_OK")
</pallas_src>

<mosaic_0001>
module attributes {stable_mosaic.version = 11 : i64} {
  func.func @_dwt_kernel(%arg0: i32, %arg1: i32, %arg2: i32, %arg3: memref<8x16x16xf32, #tpu.memory_space<vmem>>, %arg4: memref<16x16xf32, #tpu.memory_space<vmem>>, %arg5: memref<16x16xf32, #tpu.memory_space<vmem>>, %arg6: memref<8x8x8xf32, #tpu.memory_space<vmem>>, %arg7: memref<8x3x8x8xf32, #tpu.memory_space<vmem>>) attributes {dimension_semantics = [#tpu.dimension_semantics<parallel>, #tpu.dimension_semantics<parallel>, #tpu.dimension_semantics<parallel>], iteration_bounds = array<i64: 1, 1, 1>, scalar_prefetch = 0 : i64, scratch_operands = 0 : i64, tpu.core_type = #tpu.core_type<tc>, window_params = [{transform_indices = @transform_0, window_bounds = array<i64: 8, 16, 16>}, {pipeline_mode = #tpu.pipeline_mode<synchronous>, transform_indices = @transform_1, window_bounds = array<i64: 16, 16>}, {pipeline_mode = #tpu.pipeline_mode<synchronous>, transform_indices = @transform_2, window_bounds = array<i64: 16, 16>}, {transform_indices = @transform_3, window_bounds = array<i64: 8, 8, 8>}, {transform_indices = @transform_4, window_bounds = array<i64: 8, 3, 8, 8>}]} {
    %c0 = arith.constant 0 : index
    %c0_0 = arith.constant 0 : index
    %0 = vector.load %arg4[%c0, %c0_0] : memref<16x16xf32, #tpu.memory_space<vmem>>, vector<16x16xf32>
    %c0_1 = arith.constant 0 : index
    %c0_2 = arith.constant 0 : index
    %1 = vector.load %arg5[%c0_1, %c0_2] : memref<16x16xf32, #tpu.memory_space<vmem>>, vector<16x16xf32>
    %c0_3 = arith.constant 0 : index
    %c0_4 = arith.constant 0 : index
    %c0_5 = arith.constant 0 : index
    %2 = vector.load %arg3[%c0_3, %c0_4, %c0_5] : memref<8x16x16xf32, #tpu.memory_space<vmem>>, vector<8x16x16xf32>
    %3 = vector.shape_cast %2 : vector<8x16x16xf32> to vector<128x16xf32>
    %cst = arith.constant dense<0.000000e+00> : vector<128x16xf32>
    %4 = tpu.matmul %3, %0, %cst {dimension_numbers = #tpu.dot_dimension_numbers<[1], [0], [0], [1], [0, 0, 1, 1], [], []>} : vector<128x16xf32>, vector<16x16xf32>, vector<128x16xf32> -> vector<128x16xf32>
    %5 = vector.extract_strided_slice %4 {offsets = [0, 0], sizes = [16, 16], strides = [1, 1]} : vector<128x16xf32> to vector<16x16xf32>
    %cst_6 = arith.constant dense<0.000000e+00> : vector<16x16xf32>
    %6 = tpu.matmul %1, %5, %cst_6 {dimension_numbers = #tpu.dot_dimension_numbers<[1], [0], [0], [1], [0, 0, 1, 1], [], []>} : vector<16x16xf32>, vector<16x16xf32>, vector<16x16xf32> -> vector<16x16xf32>
    %7 = vector.extract_strided_slice %6 {offsets = [0, 0], sizes = [8, 8], strides = [1, 1]} : vector<16x16xf32> to vector<8x8xf32>
    %c0_7 = arith.constant 0 : index
    %c0_8 = arith.constant 0 : index
    %c0_9 = arith.constant 0 : index
    %8 = vector.load %arg6[%c0_7, %c0_8, %c0_9] : memref<8x8x8xf32, #tpu.memory_space<vmem>>, vector<1x8x8xf32>
    %9 = vector.shape_cast %8 : vector<1x8x8xf32> to vector<8x8xf32>
    %10 = vector.shape_cast %7 : vector<8x8xf32> to vector<1x8x8xf32>
    tpu.vector_store %arg6[%c0_7, %c0_8, %c0_9], %10 {strides = array<i32>} : memref<8x8x8xf32, #tpu.memory_space<vmem>>, vector<1x8x8xf32>,
    %11 = vector.extract_strided_slice %6 {offsets = [8, 0], sizes = [8, 8], strides = [1, 1]} : vector<16x16xf32> to vector<8x8xf32>
    %c0_10 = arith.constant 0 : index
    %c0_11 = arith.constant 0 : index
    %c0_12 = arith.constant 0 : index
    %c0_13 = arith.constant 0 : index
    %12 = vector.load %arg7[%c0_10, %c0_11, %c0_12, %c0_13] : memref<8x3x8x8xf32, #tpu.memory_space<vmem>>, vector<1x1x8x8xf32>
    %13 = vector.shape_cast %12 : vector<1x1x8x8xf32> to vector<8x8xf32>
    %14 = vector.shape_cast %11 : vector<8x8xf32> to vector<1x1x8x8xf32>
    tpu.vector_store %arg7[%c0_10, %c0_11, %c0_12, %c0_13], %14 {strides = array<i32>} : memref<8x3x8x8xf32, #tpu.memory_space<vmem>>, vector<1x1x8x8xf32>,
    %15 = vector.extract_strided_slice %6 {offsets = [0, 8], sizes = [8, 8], strides = [1, 1]} : vector<16x16xf32> to vector<8x8xf32>
    %c0_14 = arith.constant 0 : index
    %c1 = arith.constant 1 : index
    %c0_15 = arith.constant 0 : index
    %c0_16 = arith.constant 0 : index
    %16 = vector.load %arg7[%c0_14, %c1, %c0_15, %c0_16] : memref<8x3x8x8xf32, #tpu.memory_space<vmem>>, vector<1x1x8x8xf32>
    %17 = vector.shape_cast %16 : vector<1x1x8x8xf32> to vector<8x8xf32>
    %18 = vector.shape_cast %15 : vector<8x8xf32> to vector<1x1x8x8xf32>
    tpu.vector_store %arg7[%c0_14, %c1, %c0_15, %c0_16], %18 {strides = array<i32>} : memref<8x3x8x8xf32, #tpu.memory_space<vmem>>, vector<1x1x8x8xf32>,
    %19 = vector.extract_strided_slice %6 {offsets = [8, 8], sizes = [8, 8], strides = [1, 1]} : vector<16x16xf32> to vector<8x8xf32>
    %c0_17 = arith.constant 0 : index
    %c2 = arith.constant 2 : index
    %c0_18 = arith.constant 0 : index
    %c0_19 = arith.constant 0 : index
    %20 = vector.load %arg7[%c0_17, %c2, %c0_18, %c0_19] : memref<8x3x8x8xf32, #tpu.memory_space<vmem>>, vector<1x1x8x8xf32>
    %21 = vector.shape_cast %20 : vector<1x1x8x8xf32> to vector<8x8xf32>
    %22 = vector.shape_cast %19 : vector<8x8xf32> to vector<1x1x8x8xf32>
    tpu.vector_store %arg7[%c0_17, %c2, %c0_18, %c0_19], %22 {strides = array<i32>} : memref<8x3x8x8xf32, #tpu.memory_space<vmem>>, vector<1x1x8x8xf32>,
    %23 = vector.extract_strided_slice %4 {offsets = [16, 0], sizes = [16, 16], strides = [1, 1]} : vector<128x16xf32> to vector<16x16xf32>
    %cst_20 = arith.constant dense<0.000000e+00> : vector<16x16xf32>
    %24 = tpu.matmul %1, %23, %cst_20 {dimension_numbers = #tpu.dot_dimension_numbers<[1], [0], [0], [1], [0, 0, 1, 1], [], []>} : vector<16x16xf32>, vector<16x16xf32>, vector<16x16xf32> -> vector<16x16xf32>
    %25 = vector.extract_strided_slice %24 {offsets = [0, 0], sizes = [8, 8], strides = [1, 1]} : vector<16x16xf32> to vector<8x8xf32>
    %c1_21 = arith.constant 1 : index
    %c0_22 = arith.constant 0 : index
    %c0_23 = arith.constant 0 : index
    %26 = vector.load %arg6[%c1_21, %c0_22, %c0_23] : memref<8x8x8xf32, #tpu.memory_space<vmem>>, vector<1x8x8xf32>
    %27 = vector.shape_cast %26 : vector<1x8x8xf32> to vector<8x8xf32>
    %28 = vector.shape_cast %25 : vector<8x8xf32> to vector<1x8x8xf32>
    tpu.vector_store %arg6[%c1_21, %c0_22, %c0_23], %28 {strides = array<i32>} : memref<8x8x8xf32, #tpu.memory_space<vmem>>, vector<1x8x8xf32>,
    %29 = vector.extract_strided_slice %24 {offsets = [8, 0], sizes = [8, 8], strides = [1, 1]} : vector<16x16xf32> to vector<8x8xf32>
    %c1_24 = arith.constant 1 : index
    %c0_25 = arith.constant 0 : index
    %c0_26 = arith.constant 0 : index
    %c0_27 = arith.constant 0 : index
    %30 = vector.load %arg7[%c1_24, %c0_25, %c0_26, %c0_27] : memref<8x3x8x8xf32, #tpu.memory_space<vmem>>, vector<1x1x8x8xf32>
    %31 = vector.shape_cast %30 : vector<1x1x8x8xf32> to vector<8x8xf32>
    %32 = vector.shape_cast %29 : vector<8x8xf32> to vector<1x1x8x8xf32>
    tpu.vector_store %arg7[%c1_24, %c0_25, %c0_26, %c0_27], %32 {strides = array<i32>} : memref<8x3x8x8xf32, #tpu.memory_space<vmem>>, vector<1x1x8x8xf32>,
    %33 = vector.extract_strided_slice %24 {offsets = [0, 8], sizes = [8, 8], strides = [1, 1]} : vector<16x16xf32> to vector<8x8xf32>
    %c1_28 = arith.constant 1 : index
    %c1_29 = arith.constant 1 : index
    %c0_30 = arith.constant 0 : index
    %c0_31 = arith.constant 0 : index
    %34 = vector.load %arg7[%c1_28, %c1_29, %c0_30, %c0_31] : memref<8x3x8x8xf32, #tpu.memory_space<vmem>>, vector<1x1x8x8xf32>
    %35 = vector.shape_cast %34 : vector<1x1x8x8xf32> to vector<8x8xf32>
    %36 = vector.shape_cast %33 : vector<8x8xf32> to vector<1x1x8x8xf32>
    tpu.vector_store %arg7[%c1_28, %c1_29, %c0_30, %c0_31], %36 {strides = array<i32>} : memref<8x3x8x8xf32, #tpu.memory_space<vmem>>, vector<1x1x8x8xf32>,
    %37 = vector.extract_strided_slice %24 {offsets = [8, 8], sizes = [8, 8], strides = [1, 1]} : vector<16x16xf32> to vector<8x8xf32>
    %c1_32 = arith.constant 1 : index
    %c2_33 = arith.constant 2 : index
    %c0_34 = arith.constant 0 : index
    %c0_35 = arith.constant 0 : index
    %38 = vector.load %arg7[%c1_32, %c2_33, %c0_34, %c0_35] : memref<8x3x8x8xf32, #tpu.memory_space<vmem>>, vector<1x1x8x8xf32>
    %39 = vector.shape_cast %38 : vector<1x1x8x8xf32> to vector<8x8xf32>
    %40 = vector.shape_cast %37 : vector<8x8xf32> to vector<1x1x8x8xf32>
    tpu.vector_store %arg7[%c1_32, %c2_33, %c0_34, %c0_35], %40 {strides = array<i32>} : memref<8x3x8x8xf32, #tpu.memory_space<vmem>>, vector<1x1x8x8xf32>,
    %41 = vector.extract_strided_slice %4 {offsets = [32, 0], sizes = [16, 16], strides = [1, 1]} : vector<128x16xf32> to vector<16x16xf32>
    %cst_36 = arith.constant dense<0.000000e+00> : vector<16x16xf32>
    %42 = tpu.matmul %1, %41, %cst_36 {dimension_numbers = #tpu.dot_dimension_numbers<[1], [0], [0], [1], [0, 0, 1, 1], [], []>} : vector<16x16xf32>, vector<16x16xf32>, vector<16x16xf32> -> vector<16x16xf32>
    %43 = vector.extract_strided_slice %42 {offsets = [0, 0], sizes = [8, 8], strides = [1, 1]} : vector<16x16xf32> to vector<8x8xf32>
    %c2_37 = arith.constant 2 : index
    %c0_38 = arith.constant 0 : index
    %c0_39 = arith.constant 0 : index
    %44 = vector.load %arg6[%c2_37, %c0_38, %c0_39] : memref<8x8x8xf32, #tpu.memory_space<vmem>>, vector<1x8x8xf32>
    %45 = vector.shape_cast %44 : vector<1x8x8xf32> to vector<8x8xf32>
    %46 = vector.shape_cast %43 : vector<8x8xf32> to vector<1x8x8xf32>
    tpu.vector_store %arg6[%c2_37, %c0_38, %c0_39], %46 {strides = array<i32>} : memref<8x8x8xf32, #tpu.memory_space<vmem>>, vector<1x8x8xf32>,
    %47 = vector.extract_strided_slice %42 {offsets = [8, 0], sizes = [8, 8], strides = [1, 1]} : vector<16x16xf32> to vector<8x8xf32>
    %c2_40 = arith.constant 2 : index
    %c0_41 = arith.constant 0 : index
    %c0_42 = arith.constant 0 : index
    %c0_43 = arith.constant 0 : index
    %48 = vector.load %arg7[%c2_40, %c0_41, %c0_42, %c0_43] : memref<8x3x8x8xf32, #tpu.memory_space<vmem>>, vector<1x1x8x8xf32>
    %49 = vector.shape_cast %48 : vector<1x1x8x8xf32> to vector<8x8xf32>
    %50 = vector.shape_cast %47 : vector<8x8xf32> to vector<1x1x8x8xf32>
    tpu.vector_store %arg7[%c2_40, %c0_41, %c0_42, %c0_43], %50 {strides = array<i32>} : memref<8x3x8x8xf32, #tpu.memory_space<vmem>>, vector<1x1x8x8xf32>,
    %51 = vector.extract_strided_slice %42 {offsets = [0, 8], sizes = [8, 8], strides = [1, 1]} : vector<16x16xf32> to vector<8x8xf32>
    %c2_44 = arith.constant 2 : index
    %c1_45 = arith.constant 1 : index
    %c0_46 = arith.constant 0 : index
    %c0_47 = arith.constant 0 : index
    %52 = vector.load %arg7[%c2_44, %c1_45, %c0_46, %c0_47] : memref<8x3x8x8xf32, #tpu.memory_space<vmem>>, vector<1x1x8x8xf32>
    %53 = vector.shape_cast %52 : vector<1x1x8x8xf32> to vector<8x8xf32>
    %54 = vector.shape_cast %51 : vector<8x8xf32> to vector<1x1x8x8xf32>
    tpu.vector_store %arg7[%c2_44, %c1_45, %c0_46, %c0_47], %54 {strides = array<i32>} : memref<8x3x8x8xf32, #tpu.memory_space<vmem>>, vector<1x1x8x8xf32>,
    %55 = vector.extract_strided_slice %42 {offsets = [8, 8], sizes = [8, 8], strides = [1, 1]} : vector<16x16xf32> to vector<8x8xf32>
    %c2_48 = arith.constant 2 : index
    %c2_49 = arith.constant 2 : index
    %c0_50 = arith.constant 0 : index
    %c0_51 = arith.constant 0 : index
    %56 = vector.load %arg7[%c2_48, %c2_49, %c0_50, %c0_51] : memref<8x3x8x8xf32, #tpu.memory_space<vmem>>, vector<1x1x8x8xf32>
    %57 = vector.shape_cast %56 : vector<1x1x8x8xf32> to vector<8x8xf32>
    %58 = vector.shape_cast %55 : vector<8x8xf32> to vector<1x1x8x8xf32>
    tpu.vector_store %arg7[%c2_48, %c2_49, %c0_50, %c0_51], %58 {strides = array<i32>} : memref<8x3x8x8xf32, #tpu.memory_space<vmem>>, vector<1x1x8x8xf32>,
    %59 = vector.extract_strided_slice %4 {offsets = [48, 0], sizes = [16, 16], strides = [1, 1]} : vector<128x16xf32> to vector<16x16xf32>
    %cst_52 = arith.constant dense<0.000000e+00> : vector<16x16xf32>
    %60 = tpu.matmul %1, %59, %cst_52 {dimension_numbers = #tpu.dot_dimension_numbers<[1], [0], [0], [1], [0, 0, 1, 1], [], []>} : vector<16x16xf32>, vector<16x16xf32>, vector<16x16xf32> -> vector<16x16xf32>
    %61 = vector.extract_strided_slice %60 {offsets = [0, 0], sizes = [8, 8], strides = [1, 1]} : vector<16x16xf32> to vector<8x8xf32>
    %c3 = arith.constant 3 : index
    %c0_53 = arith.constant 0 : index
    %c0_54 = arith.constant 0 : index
    %62 = vector.load %arg6[%c3, %c0_53, %c0_54] : memref<8x8x8xf32, #tpu.memory_space<vmem>>, vector<1x8x8xf32>
    %63 = vector.shape_cast %62 : vector<1x8x8xf32> to vector<8x8xf32>
    %64 = vector.shape_cast %61 : vector<8x8xf32> to vector<1x8x8xf32>
    tpu.vector_store %arg6[%c3, %c0_53, %c0_54], %64 {strides = array<i32>} : memref<8x8x8xf32, #tpu.memory_space<vmem>>, vector<1x8x8xf32>,
    %65 = vector.extract_strided_slice %60 {offsets = [8, 0], sizes = [8, 8], strides = [1, 1]} : vector<16x16xf32> to vector<8x8xf32>
    %c3_55 = arith.constant 3 : index
    %c0_56 = arith.constant 0 : index
    %c0_57 = arith.constant 0 : index
    %c0_58 = arith.constant 0 : index
    %66 = vector.load %arg7[%c3_55, %c0_56, %c0_57, %c0_58] : memref<8x3x8x8xf32, #tpu.memory_space<vmem>>, vector<1x1x8x8xf32>
    %67 = vector.shape_cast %66 : vector<1x1x8x8xf32> to vector<8x8xf32>
    %68 = vector.shape_cast %65 : vector<8x8xf32> to vector<1x1x8x8xf32>
    tpu.vector_store %arg7[%c3_55, %c0_56, %c0_57, %c0_58], %68 {strides = array<i32>} : memref<8x3x8x8xf32, #tpu.memory_space<vmem>>, vector<1x1x8x8xf32>,
    %69 = vector.extract_strided_slice %60 {offsets = [0, 8], sizes = [8, 8], strides = [1, 1]} : vector<16x16xf32> to vector<8x8xf32>
    %c3_59 = arith.constant 3 : index
    %c1_60 = arith.constant 1 : index
    %c0_61 = arith.constant 0 : index
    %c0_62 = arith.constant 0 : index
    %70 = vector.load %arg7[%c3_59, %c1_60, %c0_61, %c0_62] : memref<8x3x8x8xf32, #tpu.memory_space<vmem>>, vector<1x1x8x8xf32>
    %71 = vector.shape_cast %70 : vector<1x1x8x8xf32> to vector<8x8xf32>
    %72 = vector.shape_cast %69 : vector<8x8xf32> to vector<1x1x8x8xf32>
    tpu.vector_store %arg7[%c3_59, %c1_60, %c0_61, %c0_62], %72 {strides = array<i32>} : memref<8x3x8x8xf32, #tpu.memory_space<vmem>>, vector<1x1x8x8xf32>,
    %73 = vector.extract_strided_slice %60 {offsets = [8, 8], sizes = [8, 8], strides = [1, 1]} : vector<16x16xf32> to vector<8x8xf32>
    %c3_63 = arith.constant 3 : index
    %c2_64 = arith.constant 2 : index
    %c0_65 = arith.constant 0 : index
    %c0_66 = arith.constant 0 : index
    %74 = vector.load %arg7[%c3_63, %c2_64, %c0_65, %c0_66] : memref<8x3x8x8xf32, #tpu.memory_space<vmem>>, vector<1x1x8x8xf32>
    %75 = vector.shape_cast %74 : vector<1x1x8x8xf32> to vector<8x8xf32>
    %76 = vector.shape_cast %73 : vector<8x8xf32> to vector<1x1x8x8xf32>
    tpu.vector_store %arg7[%c3_63, %c2_64, %c0_65, %c0_66], %76 {strides = array<i32>} : memref<8x3x8x8xf32, #tpu.memory_space<vmem>>, vector<1x1x8x8xf32>,
    %77 = vector.extract_strided_slice %4 {offsets = [64, 0], sizes = [16, 16], strides = [1, 1]} : vector<128x16xf32> to vector<16x16xf32>
    %cst_67 = arith.constant dense<0.000000e+00> : vector<16x16xf32>
    %78 = tpu.matmul %1, %77, %cst_67 {dimension_numbers = #tpu.dot_dimension_numbers<[1], [0], [0], [1], [0, 0, 1, 1], [], []>} : vector<16x16xf32>, vector<16x16xf32>, vector<16x16xf32> -> vector<16x16xf32>
    %79 = vector.extract_strided_slice %78 {offsets = [0, 0], sizes = [8, 8], strides = [1, 1]} : vector<16x16xf32> to vector<8x8xf32>
    %c4 = arith.constant 4 : index
    %c0_68 = arith.constant 0 : index
    %c0_69 = arith.constant 0 : index
    %80 = vector.load %arg6[%c4, %c0_68, %c0_69] : memref<8x8x8xf32, #tpu.memory_space<vmem>>, vector<1x8x8xf32>
    %81 = vector.shape_cast %80 : vector<1x8x8xf32> to vector<8x8xf32>
    %82 = vector.shape_cast %79 : vector<8x8xf32> to vector<1x8x8xf32>
    tpu.vector_store %arg6[%c4, %c0_68, %c0_69], %82 {strides = array<i32>} : memref<8x8x8xf32, #tpu.memory_space<vmem>>, vector<1x8x8xf32>,
    %83 = vector.extract_strided_slice %78 {offsets = [8, 0], sizes = [8, 8], strides = [1, 1]} : vector<16x16xf32> to vector<8x8xf32>
    %c4_70 = arith.constant 4 : index
    %c0_71 = arith.constant 0 : index
    %c0_72 = arith.constant 0 : index
    %c0_73 = arith.constant 0 : index
    %84 = vector.load %arg7[%c4_70, %c0_71, %c0_72, %c0_73] : memref<8x3x8x8xf32, #tpu.memory_space<vmem>>, vector<1x1x8x8xf32>
    %85 = vector.shape_cast %84 : vector<1x1x8x8xf32> to vector<8x8xf32>
    %86 = vector.shape_cast %83 : vector<8x8xf32> to vector<1x1x8x8xf32>
    tpu.vector_store %arg7[%c4_70, %c0_71, %c0_72, %c0_73], %86 {strides = array<i32>} : memref<8x3x8x8xf32, #tpu.memory_space<vmem>>, vector<1x1x8x8xf32>,
    %87 = vector.extract_strided_slice %78 {offsets = [0, 8], sizes = [8, 8], strides = [1, 1]} : vector<16x16xf32> to vector<8x8xf32>
    %c4_74 = arith.constant 4 : index
    %c1_75 = arith.constant 1 : index
    %c0_76 = arith.constant 0 : index
    %c0_77 = arith.constant 0 : index
    %88 = vector.load %arg7[%c4_74, %c1_75, %c0_76, %c0_77] : memref<8x3x8x8xf32, #tpu.memory_space<vmem>>, vector<1x1x8x8xf32>
    %89 = vector.shape_cast %88 : vector<1x1x8x8xf32> to vector<8x8xf32>
    %90 = vector.shape_cast %87 : vector<8x8xf32> to vector<1x1x8x8xf32>
    tpu.vector_store %arg7[%c4_74, %c1_75, %c0_76, %c0_77], %90 {strides = array<i32>} : memref<8x3x8x8xf32, #tpu.memory_space<vmem>>, vector<1x1x8x8xf32>,
    %91 = vector.extract_strided_slice %78 {offsets = [8, 8], sizes = [8, 8], strides = [1, 1]} : vector<16x16xf32> to vector<8x8xf32>
    %c4_78 = arith.constant 4 : index
    %c2_79 = arith.constant 2 : index
    %c0_80 = arith.constant 0 : index
    %c0_81 = arith.constant 0 : index
    %92 = vector.load %arg7[%c4_78, %c2_79, %c0_80, %c0_81] : memref<8x3x8x8xf32, #tpu.memory_space<vmem>>, vector<1x1x8x8xf32>
    %93 = vector.shape_cast %92 : vector<1x1x8x8xf32> to vector<8x8xf32>
    %94 = vector.shape_cast %91 : vector<8x8xf32> to vector<1x1x8x8xf32>
    tpu.vector_store %arg7[%c4_78, %c2_79, %c0_80, %c0_81], %94 {strides = array<i32>} : memref<8x3x8x8xf32, #tpu.memory_space<vmem>>, vector<1x1x8x8xf32>,
    %95 = vector.extract_strided_slice %4 {offsets = [80, 0], sizes = [16, 16], strides = [1, 1]} : vector<128x16xf32> to vector<16x16xf32>
    %cst_82 = arith.constant dense<0.000000e+00> : vector<16x16xf32>
    %96 = tpu.matmul %1, %95, %cst_82 {dimension_numbers = #tpu.dot_dimension_numbers<[1], [0], [0], [1], [0, 0, 1, 1], [], []>} : vector<16x16xf32>, vector<16x16xf32>, vector<16x16xf32> -> vector<16x16xf32>
    %97 = vector.extract_strided_slice %96 {offsets = [0, 0], sizes = [8, 8], strides = [1, 1]} : vector<16x16xf32> to vector<8x8xf32>
    %c5 = arith.constant 5 : index
    %c0_83 = arith.constant 0 : index
    %c0_84 = arith.constant 0 : index
    %98 = vector.load %arg6[%c5, %c0_83, %c0_84] : memref<8x8x8xf32, #tpu.memory_space<vmem>>, vector<1x8x8xf32>
    %99 = vector.shape_cast %98 : vector<1x8x8xf32> to vector<8x8xf32>
    %100 = vector.shape_cast %97 : vector<8x8xf32> to vector<1x8x8xf32>
    tpu.vector_store %arg6[%c5, %c0_83, %c0_84], %100 {strides = array<i32>} : memref<8x8x8xf32, #tpu.memory_space<vmem>>, vector<1x8x8xf32>,
    %101 = vector.extract_strided_slice %96 {offsets = [8, 0], sizes = [8, 8], strides = [1, 1]} : vector<16x16xf32> to vector<8x8xf32>
    %c5_85 = arith.constant 5 : index
    %c0_86 = arith.constant 0 : index
    %c0_87 = arith.constant 0 : index
    %c0_88 = arith.constant 0 : index
    %102 = vector.load %arg7[%c5_85, %c0_86, %c0_87, %c0_88] : memref<8x3x8x8xf32, #tpu.memory_space<vmem>>, vector<1x1x8x8xf32>
    %103 = vector.shape_cast %102 : vector<1x1x8x8xf32> to vector<8x8xf32>
    %104 = vector.shape_cast %101 : vector<8x8xf32> to vector<1x1x8x8xf32>
    tpu.vector_store %arg7[%c5_85, %c0_86, %c0_87, %c0_88], %104 {strides = array<i32>} : memref<8x3x8x8xf32, #tpu.memory_space<vmem>>, vector<1x1x8x8xf32>,
    %105 = vector.extract_strided_slice %96 {offsets = [0, 8], sizes = [8, 8], strides = [1, 1]} : vector<16x16xf32> to vector<8x8xf32>
    %c5_89 = arith.constant 5 : index
    %c1_90 = arith.constant 1 : index
    %c0_91 = arith.constant 0 : index
    %c0_92 = arith.constant 0 : index
    %106 = vector.load %arg7[%c5_89, %c1_90, %c0_91, %c0_92] : memref<8x3x8x8xf32, #tpu.memory_space<vmem>>, vector<1x1x8x8xf32>
    %107 = vector.shape_cast %106 : vector<1x1x8x8xf32> to vector<8x8xf32>
    %108 = vector.shape_cast %105 : vector<8x8xf32> to vector<1x1x8x8xf32>
    tpu.vector_store %arg7[%c5_89, %c1_90, %c0_91, %c0_92], %108 {strides = array<i32>} : memref<8x3x8x8xf32, #tpu.memory_space<vmem>>, vector<1x1x8x8xf32>,
    %109 = vector.extract_strided_slice %96 {offsets = [8, 8], sizes = [8, 8], strides = [1, 1]} : vector<16x16xf32> to vector<8x8xf32>
    %c5_93 = arith.constant 5 : index
    %c2_94 = arith.constant 2 : index
    %c0_95 = arith.constant 0 : index
    %c0_96 = arith.constant 0 : index
    %110 = vector.load %arg7[%c5_93, %c2_94, %c0_95, %c0_96] : memref<8x3x8x8xf32, #tpu.memory_space<vmem>>, vector<1x1x8x8xf32>
    %111 = vector.shape_cast %110 : vector<1x1x8x8xf32> to vector<8x8xf32>
    %112 = vector.shape_cast %109 : vector<8x8xf32> to vector<1x1x8x8xf32>
    tpu.vector_store %arg7[%c5_93, %c2_94, %c0_95, %c0_96], %112 {strides = array<i32>} : memref<8x3x8x8xf32, #tpu.memory_space<vmem>>, vector<1x1x8x8xf32>,
    %113 = vector.extract_strided_slice %4 {offsets = [96, 0], sizes = [16, 16], strides = [1, 1]} : vector<128x16xf32> to vector<16x16xf32>
    %cst_97 = arith.constant dense<0.000000e+00> : vector<16x16xf32>
    %114 = tpu.matmul %1, %113, %cst_97 {dimension_numbers = #tpu.dot_dimension_numbers<[1], [0], [0], [1], [0, 0, 1, 1], [], []>} : vector<16x16xf32>, vector<16x16xf32>, vector<16x16xf32> -> vector<16x16xf32>
    %115 = vector.extract_strided_slice %114 {offsets = [0, 0], sizes = [8, 8], strides = [1, 1]} : vector<16x16xf32> to vector<8x8xf32>
    %c6 = arith.constant 6 : index
    %c0_98 = arith.constant 0 : index
    %c0_99 = arith.constant 0 : index
    %116 = vector.load %arg6[%c6, %c0_98, %c0_99] : memref<8x8x8xf32, #tpu.memory_space<vmem>>, vector<1x8x8xf32>
    %117 = vector.shape_cast %116 : vector<1x8x8xf32> to vector<8x8xf32>
    %118 = vector.shape_cast %115 : vector<8x8xf32> to vector<1x8x8xf32>
    tpu.vector_store %arg6[%c6, %c0_98, %c0_99], %118 {strides = array<i32>} : memref<8x8x8xf32, #tpu.memory_space<vmem>>, vector<1x8x8xf32>,
    %119 = vector.extract_strided_slice %114 {offsets = [8, 0], sizes = [8, 8], strides = [1, 1]} : vector<16x16xf32> to vector<8x8xf32>
    %c6_100 = arith.constant 6 : index
    %c0_101 = arith.constant 0 : index
    %c0_102 = arith.constant 0 : index
    %c0_103 = arith.constant 0 : index
    %120 = vector.load %arg7[%c6_100, %c0_101, %c0_102, %c0_103] : memref<8x3x8x8xf32, #tpu.memory_space<vmem>>, vector<1x1x8x8xf32>
    %121 = vector.shape_cast %120 : vector<1x1x8x8xf32> to vector<8x8xf32>
    %122 = vector.shape_cast %119 : vector<8x8xf32> to vector<1x1x8x8xf32>
    tpu.vector_store %arg7[%c6_100, %c0_101, %c0_102, %c0_103], %122 {strides = array<i32>} : memref<8x3x8x8xf32, #tpu.memory_space<vmem>>, vector<1x1x8x8xf32>,
    %123 = vector.extract_strided_slice %114 {offsets = [0, 8], sizes = [8, 8], strides = [1, 1]} : vector<16x16xf32> to vector<8x8xf32>
    %c6_104 = arith.constant 6 : index
    %c1_105 = arith.constant 1 : index
    %c0_106 = arith.constant 0 : index
    %c0_107 = arith.constant 0 : index
    %124 = vector.load %arg7[%c6_104, %c1_105, %c0_106, %c0_107] : memref<8x3x8x8xf32, #tpu.memory_space<vmem>>, vector<1x1x8x8xf32>
    %125 = vector.shape_cast %124 : vector<1x1x8x8xf32> to vector<8x8xf32>
    %126 = vector.shape_cast %123 : vector<8x8xf32> to vector<1x1x8x8xf32>
    tpu.vector_store %arg7[%c6_104, %c1_105, %c0_106, %c0_107], %126 {strides = array<i32>} : memref<8x3x8x8xf32, #tpu.memory_space<vmem>>, vector<1x1x8x8xf32>,
    %127 = vector.extract_strided_slice %114 {offsets = [8, 8], sizes = [8, 8], strides = [1, 1]} : vector<16x16xf32> to vector<8x8xf32>
    %c6_108 = arith.constant 6 : index
    %c2_109 = arith.constant 2 : index
    %c0_110 = arith.constant 0 : index
    %c0_111 = arith.constant 0 : index
    %128 = vector.load %arg7[%c6_108, %c2_109, %c0_110, %c0_111] : memref<8x3x8x8xf32, #tpu.memory_space<vmem>>, vector<1x1x8x8xf32>
    %129 = vector.shape_cast %128 : vector<1x1x8x8xf32> to vector<8x8xf32>
    %130 = vector.shape_cast %127 : vector<8x8xf32> to vector<1x1x8x8xf32>
    tpu.vector_store %arg7[%c6_108, %c2_109, %c0_110, %c0_111], %130 {strides = array<i32>} : memref<8x3x8x8xf32, #tpu.memory_space<vmem>>, vector<1x1x8x8xf32>,
    %131 = vector.extract_strided_slice %4 {offsets = [112, 0], sizes = [16, 16], strides = [1, 1]} : vector<128x16xf32> to vector<16x16xf32>
    %cst_112 = arith.constant dense<0.000000e+00> : vector<16x16xf32>
    %132 = tpu.matmul %1, %131, %cst_112 {dimension_numbers = #tpu.dot_dimension_numbers<[1], [0], [0], [1], [0, 0, 1, 1], [], []>} : vector<16x16xf32>, vector<16x16xf32>, vector<16x16xf32> -> vector<16x16xf32>
    %133 = vector.extract_strided_slice %132 {offsets = [0, 0], sizes = [8, 8], strides = [1, 1]} : vector<16x16xf32> to vector<8x8xf32>
    %c7 = arith.constant 7 : index
    %c0_113 = arith.constant 0 : index
    %c0_114 = arith.constant 0 : index
    %134 = vector.load %arg6[%c7, %c0_113, %c0_114] : memref<8x8x8xf32, #tpu.memory_space<vmem>>, vector<1x8x8xf32>
    %135 = vector.shape_cast %134 : vector<1x8x8xf32> to vector<8x8xf32>
    %136 = vector.shape_cast %133 : vector<8x8xf32> to vector<1x8x8xf32>
    tpu.vector_store %arg6[%c7, %c0_113, %c0_114], %136 {strides = array<i32>} : memref<8x8x8xf32, #tpu.memory_space<vmem>>, vector<1x8x8xf32>,
    %137 = vector.extract_strided_slice %132 {offsets = [8, 0], sizes = [8, 8], strides = [1, 1]} : vector<16x16xf32> to vector<8x8xf32>
    %c7_115 = arith.constant 7 : index
    %c0_116 = arith.constant 0 : index
    %c0_117 = arith.constant 0 : index
    %c0_118 = arith.constant 0 : index
    %138 = vector.load %arg7[%c7_115, %c0_116, %c0_117, %c0_118] : memref<8x3x8x8xf32, #tpu.memory_space<vmem>>, vector<1x1x8x8xf32>
    %139 = vector.shape_cast %138 : vector<1x1x8x8xf32> to vector<8x8xf32>
    %140 = vector.shape_cast %137 : vector<8x8xf32> to vector<1x1x8x8xf32>
    tpu.vector_store %arg7[%c7_115, %c0_116, %c0_117, %c0_118], %140 {strides = array<i32>} : memref<8x3x8x8xf32, #tpu.memory_space<vmem>>, vector<1x1x8x8xf32>,
    %141 = vector.extract_strided_slice %132 {offsets = [0, 8], sizes = [8, 8], strides = [1, 1]} : vector<16x16xf32> to vector<8x8xf32>
    %c7_119 = arith.constant 7 : index
    %c1_120 = arith.constant 1 : index
    %c0_121 = arith.constant 0 : index
    %c0_122 = arith.constant 0 : index
    %142 = vector.load %arg7[%c7_119, %c1_120, %c0_121, %c0_122] : memref<8x3x8x8xf32, #tpu.memory_space<vmem>>, vector<1x1x8x8xf32>
    %143 = vector.shape_cast %142 : vector<1x1x8x8xf32> to vector<8x8xf32>
    %144 = vector.shape_cast %141 : vector<8x8xf32> to vector<1x1x8x8xf32>
    tpu.vector_store %arg7[%c7_119, %c1_120, %c0_121, %c0_122], %144 {strides = array<i32>} : memref<8x3x8x8xf32, #tpu.memory_space<vmem>>, vector<1x1x8x8xf32>,
    %145 = vector.extract_strided_slice %132 {offsets = [8, 8], sizes = [8, 8], strides = [1, 1]} : vector<16x16xf32> to vector<8x8xf32>
    %c7_123 = arith.constant 7 : index
    %c2_124 = arith.constant 2 : index
    %c0_125 = arith.constant 0 : index
    %c0_126 = arith.constant 0 : index
    %146 = vector.load %arg7[%c7_123, %c2_124, %c0_125, %c0_126] : memref<8x3x8x8xf32, #tpu.memory_space<vmem>>, vector<1x1x8x8xf32>
    %147 = vector.shape_cast %146 : vector<1x1x8x8xf32> to vector<8x8xf32>
    %148 = vector.shape_cast %145 : vector<8x8xf32> to vector<1x1x8x8xf32>
    tpu.vector_store %arg7[%c7_123, %c2_124, %c0_125, %c0_126], %148 {strides = array<i32>} : memref<8x3x8x8xf32, #tpu.memory_space<vmem>>, vector<1x1x8x8xf32>,
    return
  }
  func.func @transform_0(%arg0: i32, %arg1: i32, %arg2: i32) -> (i32, i32, i32) {
    %c0_i32 = arith.constant 0 : i32
    return %arg0, %arg1, %arg2 : i32, i32, i32
  }
  func.func @transform_1(%arg0: i32, %arg1: i32, %arg2: i32) -> (i32, i32) {
    %c0_i32 = arith.constant 0 : i32
    %c0_i32_0 = arith.constant 0 : i32
    %c0_i32_1 = arith.constant 0 : i32
    return %c0_i32, %c0_i32_0 : i32, i32
  }
  func.func @transform_2(%arg0: i32, %arg1: i32, %arg2: i32) -> (i32, i32) {
    %c0_i32 = arith.constant 0 : i32
    %c0_i32_0 = arith.constant 0 : i32
    %c0_i32_1 = arith.constant 0 : i32
    return %c0_i32, %c0_i32_0 : i32, i32
  }
  func.func @transform_3(%arg0: i32, %arg1: i32, %arg2: i32) -> (i32, i32, i32) {
    %c0_i32 = arith.constant 0 : i32
    return %arg0, %arg1, %arg2 : i32, i32, i32
  }
  func.func @transform_4(%arg0: i32, %arg1: i32, %arg2: i32) -> (i32, i32, i32, i32) {
    %c0_i32 = arith.constant 0 : i32
    %c0_i32_0 = arith.constant 0 : i32
    return %arg0, %c0_i32, %arg1, %arg2 : i32, i32, i32, i32
  }
}

</mosaic_0001>

<bundles_post_ra>
// kernel: tpu_custom_call.1
= control target key start
LH: loop header
LB: loop body
LE: loop exit
PB: predicated region body
PF: predicated region fallthrough
CT: control target
= control target key end

     0   :  { %10 = vsyncpa [#allocation3], 0  ;;  %s1563_s0 = inlined_call_operand.hbm [shape: f32[8,16,16], index: 0, kind: input, shape index: {}]   ;;  %s1564_s1 = inlined_call_operand.hbm [shape: f32[16,16], index: 1, kind: input, shape index: {}]   ;;  %s1565_s2 = inlined_call_operand.hbm [shape: f32[16,16], index: 2, kind: input, shape index: {}]   ;;  %s1566_s3 = inlined_call_operand.hbm [shape: f32[8,8,8], index: 3, kind: output, shape index: {0}]   ;;  %s1567_s4 = inlined_call_operand.hbm [shape: f32[8,3,8,8], index: 4, kind: output, shape index: {1}]  }
   0x1   :  { %11 = vsyncpa [#allocation6], 0 }
   0x2   :  { %12 = vsyncpa [#allocation4], 0 }
   0x3   :  { %13 = vsyncpa [#allocation10], 0  ;;  %s1368_s15 = smov [#allocation5]   ;;  %s1369_s17 = smov [#allocation2]  }
   0x4   :  { %s31_s16 = sshll.u32 %s1368_s15, 4  ;;  %s19_s18 = sshll.u32 %s1369_s17, 4  ;;  %s32_s16 = int_to_ptr.vmem [resolvable:$true] %s31_s16  ;;  %s1401_s18 = int_to_ptr.vmem [resolvable:$true] %s19_s18 }
   0x5   :  { %s1250_s21 = scalar_lea.hbm %s1564_s1, 256 }
   0x6   :  { %p1251_p0 = scmp.ne.s32.totalorder %s1564_s1, %s1250_s21  ;;  %p1254_p1 = scmp.lt.u32.totalorder %s1250_s21, %s1564_s1 }
   0x8   :  { %p1256_p2 = pnand %p1254_p1, %p1251_p0 }
   0xa   :  { %1259 = shalt.err (!%p1256_p2)
}
   0xb   :  { %s1260_s26 = scalar_lea.vmem %s32_s16, 256  ;;  %p1265_p4 = scmp.lt.s32.totalorder %s32_s16, %s32_s16 }
   0xc   :  { %p1261_p3 = scmp.ne.s32.totalorder %s32_s16, %s1260_s26  ;;  %p1266_p5 = scmp.lt.s32.totalorder %s1260_s26, %s1260_s26 }
   0xe   :  { %p1267_p6 = por %p1266_p5, %p1265_p4 }
  0x10   :  { %p1268_p7 = pnand %p1267_p6, %p1261_p3 }
  0x12   :  { %1271 = shalt.err (!%p1268_p7)
}
  0x13   :  { %s1370_s27 = smov 128   ;;  %s1371_s28 = smov 8  }
  0x14   :  { %37 = dma.hbm_to_vmem [thread:$0]  %s1564_s1, 256, %s32_s16, [#allocation6], %s1370_s27, %s1370_s27, %s1371_s28  }
  0x15   :  { %s1272_s7 = scalar_lea.hbm %s1563_s0, 2048 }
  0x16   :  { %p1273_p8 = scmp.ne.s32.totalorder %s1563_s0, %s1272_s7  ;;  %p1276_p9 = scmp.lt.u32.totalorder %s1272_s7, %s1563_s0 }
  0x18   :  { %p1278_p10 = pnand %p1276_p9, %p1273_p8 }
  0x1a   :  { %1281 = shalt.err (!%p1278_p10)
}
  0x1b   :  { %s1282_s12 = scalar_lea.vmem %s1401_s18, 2048  ;;  %p1287_p12 = scmp.lt.s32.totalorder %s1401_s18, %s1401_s18 }
  0x1c   :  { %p1283_p11 = scmp.ne.s32.totalorder %s1401_s18, %s1282_s12  ;;  %p1288_p13 = scmp.lt.s32.totalorder %s1282_s12, %s1282_s12 }
  0x1e   :  { %p1289_p0 = por %p1288_p13, %p1287_p12 }
  0x20   :  { %p1290_p1 = pnand %p1289_p0, %p1283_p11 }
  0x22   :  { %1293 = shalt.err (!%p1290_p1)
}
  0x23   :  { %25 = dma.hbm_to_vmem [thread:$0]  %s1563_s0, 2048, %s1401_s18, [#allocation3], %s1370_s27, %s1370_s27, %s1371_s28  }
  0x24   :  { %s1372_s14 = smov [#allocation7]   ;;  %s1294_s19 = scalar_lea.hbm %s1565_s2, 256 }
  0x25   :  { %s43_s15 = sshll.u32 %s1372_s14, 4  ;;  %p1295_p2 = scmp.ne.s32.totalorder %s1565_s2, %s1294_s19  ;;  %s44_s15 = int_to_ptr.vmem [resolvable:$true] %s43_s15 }
  0x26   :  { %p1298_p3 = scmp.lt.u32.totalorder %s1294_s19, %s1565_s2 }
  0x28   :  { %p1300_p4 = pnand %p1298_p3, %p1295_p2 }
  0x2a   :  { %1303 = shalt.err (!%p1300_p4)
}
  0x2b   :  { %s1304_s24 = scalar_lea.vmem %s44_s15, 256  ;;  %p1309_p6 = scmp.lt.s32.totalorder %s44_s15, %s44_s15 }
  0x2c   :  { %p1305_p5 = scmp.ne.s32.totalorder %s44_s15, %s1304_s24  ;;  %p1310_p7 = scmp.lt.s32.totalorder %s1304_s24, %s1304_s24 }
  0x2e   :  { %p1311_p8 = por %p1310_p7, %p1309_p6 }
  0x30   :  { %p1312_p9 = pnand %p1311_p8, %p1305_p5 }
  0x32   :  { %1315 = shalt.err (!%p1312_p9)
}
  0x33   :  { %49 = dma.hbm_to_vmem [thread:$0]  %s1565_s2, 256, %s44_s15, [#allocation6], %s1370_s27, %s1370_s27, %s1371_s28  }
  0x34   :  { %1360 = dma.done.wait [#allocation3], 2048  }
  0x35   :  { %1361 = vsyncadd [#allocation3], 4294965248 }
  0x36   :  { %1362 = dma.done.wait [#allocation6], 512  }
  0x37   :  { %1363 = vsyncadd [#allocation6], 4294966784  ;;  %vm79_vm0 = vcmask 130048   ;;  %v59_v0 = vld [vmem:[#allocation5] sm:$0xff]  ;;  %v60_v1 = vld [vmem:[#allocation5 + $0x8] sm:$0xff]  ;;  %vm354_vm1 = vcmask 64512  }
  0x38   :  { %v63_v2 = vld [vmem:[#allocation2] sm:$0xff]  ;;  %v1206_v3 = vpack.c.bf16 %v60_v1, %v59_v0  ;;  %v64_v4 = vld [vmem:[#allocation2 + $0x8] sm:$0xff]  ;;  %v65_v5 = vld [vmem:[#allocation2 + $0x10] sm:$0xff]  ;;  %s1373_s2 = smov 120   ;;  %s1374_s25 = smov [#allocation8]  }
  0x39   :  { %1126 = vmatprep.mubr.msk.f32.mxu0 %vm79_vm0, %v63_v2  ;;  %v66_v6 = vld [vmem:[#allocation2 + $0x18] sm:$0xff]  ;;  %v67_v7 = vld [vmem:[#allocation2 + $0x20] sm:$0xff]  ;;  %v68_v8 = vld [vmem:[#allocation2 + $0x28] sm:$0xff]  ;;  %s1011_s26 = sshll.u32 %s1374_s25, 4  ;;  %s1012_s26 = int_to_ptr.vmem [resolvable:$true] %s1011_s26 }
  0x3a   :  { %1207 = vmatprep.subr.bf16.mxu0 %v1206_v3  ;;  %v69_v9 = vld [vmem:[#allocation2 + $0x30] sm:$0xff]  ;;  %v70_v10 = vld [vmem:[#allocation2 + $0x38] sm:$0xff]  ;;  %v71_v11 = vld [vmem:[#allocation2 + $0x40] sm:$0xff]  ;;  %s1316_s29 = scalar_lea.vmem %s1012_s26, 1024  ;;  %p1321_p11 = scmp.lt.s32.totalorder %s1012_s26, %s1012_s26 }
  0x3b   :  { %1209 = vmatpush3.bf16.msra.mxu0 %v1206_v3  ;;  %v72_v12 = vld [vmem:[#allocation2 + $0x48] sm:$0xff]  ;;  %v73_v13 = vld [vmem:[#allocation2 + $0x50] sm:$0xff]  ;;  %v74_v14 = vld [vmem:[#allocation2 + $0x58] sm:$0xff]  ;;  %p1317_p10 = scmp.ne.s32.totalorder %s1012_s26, %s1316_s29  ;;  %p1322_p12 = scmp.lt.s32.totalorder %s1316_s29, %s1316_s29 }
  0x3c   :  { %v75_v15 = vld [vmem:[#allocation2 + $0x60] sm:$0xff]  ;;  %v76_v16 = vld [vmem:[#allocation2 + $0x68] sm:$0xff]  ;;  %v77_v17 = vld [vmem:[#allocation2 + $0x70] sm:$0xff] }
  0x3d   :  { %v78_v18 = vld [vmem:[#allocation2 + $0x78] sm:$0xff]  ;;  %v61_v19 = vld [vmem:[#allocation7] sm:$0xff]  ;;  %p1323_p13 = por %p1322_p12, %p1321_p11 }
  0x3e   :  { %1127 = vmatmul.mubr.msk.f32.vlgmr.msra.gmra.mrb[0].mxu0 %vm79_vm0, %v64_v4  ;;  %1154 = vmatprep.mubr.msk.f32.mxu1 %vm79_vm0, %v61_v19  ;;  %v62_v25 = vld [vmem:[#allocation7 + $0x8] sm:$0xff] }
  0x3f   :  { %1129 = vmatprep.mubr.msk.f32.mxu0 %vm79_vm0, %v65_v5  ;;  %p1324_p0 = pnand %p1323_p13, %p1317_p10 }
  0x42   :  { %1130 = vmatmul.mubr.msk.f32.gmra.mrb[2].mxu0 %vm79_vm0, %v66_v6 }
  0x43   :  { %1132 = vmatprep.mubr.msk.f32.mxu0 %vm79_vm0, %v67_v7 }
  0x46   :  { %1133 = vmatmul.mubr.msk.f32.gmra.mrb[4].mxu0 %vm79_vm0, %v68_v8 }
  0x47   :  { %1135 = vmatprep.mubr.msk.f32.mxu0 %vm79_vm0, %v69_v9 }
  0x4a   :  { %1136 = vmatmul.mubr.msk.f32.gmra.mrb[6].mxu0 %vm79_vm0, %v70_v10 }
  0x4b   :  { %1138 = vmatprep.mubr.msk.f32.mxu0 %vm79_vm0, %v71_v11 }
  0x4e   :  { %1139 = vmatmul.mubr.msk.f32.gmra.mrb[8].mxu0 %vm79_vm0, %v72_v12 }
  0x4f   :  { %1141 = vmatprep.mubr.msk.f32.mxu0 %vm79_vm0, %v73_v13 }
  0x52   :  { %1142 = vmatmul.mubr.msk.f32.gmra.mrb[10].mxu0 %vm79_vm0, %v74_v14 }
  0x53   :  { %1144 = vmatprep.mubr.msk.f32.mxu0 %vm79_vm0, %v75_v15 }
  0x56   :  { %1145 = vmatmul.mubr.msk.f32.gmra.mrb[12].mxu0 %vm79_vm0, %v76_v16 }
  0x57   :  { %1147 = vmatprep.mubr.msk.f32.mxu0 %vm79_vm0, %v77_v17 }
  0x5a   :  { %1148 = vmatmul.mubr.msk.f32.gmra.mrb[14].mxu0 %vm79_vm0, %v78_v18 }
 0x111   :  { %v1128_v20 = vpop.f32.mrb[0].mxu0 }
 0x112   :  { %v194_v21 = vpop.f32.mrb[1].mxu0 }
 0x113   :  { %v1210_v22 = vpack.c.bf16 %v1128_v20, %v194_v21 }
 0x115   :  { %v1131_v23 = vpop.f32.mrb[2].mxu0  ;;  %1211 = vmatprep.subr.bf16.mxu1 %v1210_v22 }
 0x116   :  { %v204_v24 = vpop.f32.mrb[3].mxu0  ;;  %1213 = vmatpush3.bf16.msra.mxu1 %v1210_v22 }
 0x117   :  { %v1214_v26 = vpack.c.bf16 %v1131_v23, %v204_v24 }
 0x119   :  { %1155 = vmatmul.mubr.msk.f32.vlgmr.msra.gmra.mrb[0].mxu1 %vm79_vm0, %v62_v25  ;;  %1215 = vmatprep.subr.bf16.mxu1 %v1214_v26  ;;  %v1134_v27 = vpop.f32.mrb[4].mxu0 }
 0x11a   :  { %1217 = vmatpush3.bf16.msra.mxu1 %v1214_v26  ;;  %v214_v28 = vpop.f32.mrb[5].mxu0  ;;  %1161 = vmatprep.mubr.msk.f32.mxu1 %vm79_vm0, %v61_v19 }
 0x11b   :  { %v1218_v29 = vpack.c.bf16 %v1134_v27, %v214_v28 }
 0x11d   :  { %1162 = vmatmul.mubr.msk.f32.vlgmr.msra.gmra.mrb[2].mxu1 %vm79_vm0, %v62_v25  ;;  %v1137_v30 = vpop.f32.mrb[6].mxu0  ;;  %1219 = vmatprep.subr.bf16.mxu1 %v1218_v29 }
 0x11e   :  { %v224_v31 = vpop.f32.mrb[7].mxu0  ;;  %1221 = vmatpush3.bf16.msra.mxu1 %v1218_v29  ;;  %1168 = vmatprep.mubr.msk.f32.mxu1 %vm79_vm0, %v61_v19 }
 0x11f   :  { %v1222_v32 = vpack.c.bf16 %v1137_v30, %v224_v31 }
 0x121   :  { %v1140_v33 = vpop.f32.mrb[8].mxu0  ;;  %1223 = vmatprep.subr.bf16.mxu1 %v1222_v32  ;;  %1169 = vmatmul.mubr.msk.f32.vlgmr.msra.gmra.mrb[4].mxu1 %vm79_vm0, %v62_v25 }
 0x122   :  { %v234_v34 = vpop.f32.mrb[9].mxu0  ;;  %1225 = vmatpush3.bf16.msra.mxu1 %v1222_v32  ;;  %1175 = vmatprep.mubr.msk.f32.mxu1 %vm79_vm0, %v61_v19 }
 0x123   :  { %v1226_v35 = vpack.c.bf16 %v1140_v33, %v234_v34 }
 0x125   :  { %v1143_v36 = vpop.f32.mrb[10].mxu0  ;;  %1227 = vmatprep.subr.bf16.mxu1 %v1226_v35  ;;  %1176 = vmatmul.mubr.msk.f32.vlgmr.msra.gmra.mrb[6].mxu1 %vm79_vm0, %v62_v25 }
 0x126   :  { %v244_v37 = vpop.f32.mrb[11].mxu0  ;;  %1229 = vmatpush3.bf16.msra.mxu1 %v1226_v35  ;;  %1182 = vmatprep.mubr.msk.f32.mxu1 %vm79_vm0, %v61_v19 }
 0x127   :  { %v1230_v38 = vpack.c.bf16 %v1143_v36, %v244_v37 }
 0x129   :  { %v1146_v39 = vpop.f32.mrb[12].mxu0  ;;  %1231 = vmatprep.subr.bf16.mxu1 %v1230_v38  ;;  %1183 = vmatmul.mubr.msk.f32.vlgmr.msra.gmra.mrb[8].mxu1 %vm79_vm0, %v62_v25 }
 0x12a   :  { %v254_v40 = vpop.f32.mrb[13].mxu0  ;;  %1233 = vmatpush3.bf16.msra.mxu1 %v1230_v38  ;;  %1189 = vmatprep.mubr.msk.f32.mxu1 %vm79_vm0, %v61_v19 }
 0x12b   :  { %v1234_v41 = vpack.c.bf16 %v1146_v39, %v254_v40 }
 0x12d   :  { %v1149_v42 = vpop.f32.mrb[14].mxu0  ;;  %1235 = vmatprep.subr.bf16.mxu1 %v1234_v41  ;;  %1190 = vmatmul.mubr.msk.f32.vlgmr.msra.gmra.mrb[10].mxu1 %vm79_vm0, %v62_v25 }
 0x12e   :  { %v264_v43 = vpop.f32.mrb[15].mxu0  ;;  %1237 = vmatpush3.bf16.msra.mxu1 %v1234_v41  ;;  %1196 = vmatprep.mubr.msk.f32.mxu1 %vm79_vm0, %v61_v19 }
 0x12f   :  { %v1238_v44 = vpack.c.bf16 %v1149_v42, %v264_v43 }
 0x131   :  { %1239 = vmatprep.subr.bf16.mxu1 %v1238_v44  ;;  %1197 = vmatmul.mubr.msk.f32.vlgmr.msra.gmra.mrb[12].mxu1 %vm79_vm0, %v62_v25 }
 0x132   :  { %1241 = vmatpush3.bf16.msra.mxu1 %v1238_v44  ;;  %1203 = vmatprep.mubr.msk.f32.mxu1 %vm79_vm0, %v61_v19 }
 0x135   :  { %1204 = vmatmul.mubr.msk.f32.vlgmr.msra.gmra.mrb[14].mxu1 %vm79_vm0, %v62_v25 }
 0x1ec   :  { %v1156_v45 = vpop.f32.mrb[0].mxu1 }
 0x1ed   :  { %356 = vst.msk [vmem:[#allocation9] sm:$0xff] %vm354_vm1, %v1156_v45  ;;  %364 = vrot.lane.b32.xlu0 %v1156_v45, %s1373_s2  ;;  %v345_v46 = vpop.f32.mrb[1].mxu1 }
 0x1ee   :  { %355 = vst.msk [vmem:[#allocation8] sm:$0xff] %vm354_vm1, %v345_v46 }
 0x1f0   :  { %v1163_v47 = vpop.f32.mrb[2].mxu1 }
 0x1f1   :  { %447 = vst.msk [vmem:[#allocation9 + $0x18] sm:$0xff] %vm354_vm1, %v1163_v47  ;;  %358 = vrot.lane.b32.xlu0 %v345_v46, %s1373_s2  ;;  %455 = vrot.lane.b32.xlu1 %v1163_v47, %s1373_s2  ;;  %v435_v48 = vpop.f32.mrb[3].mxu1 }
 0x1f2   :  { %445 = vst.msk [vmem:[#allocation8 + $0x8] sm:$0xff] %vm354_vm1, %v435_v48 }
 0x1f4   :  { %v1170_v49 = vpop.f32.mrb[4].mxu1 }
 0x1f5   :  { %449 = vrot.lane.b32.xlu1 %v435_v48, %s1373_s2  ;;  %538 = vst.msk [vmem:[#allocation9 + $0x30] sm:$0xff] %vm354_vm1, %v1170_v49  ;;  %v526_v50 = vpop.f32.mrb[5].mxu1 }
 0x1f6   :  { %536 = vst.msk [vmem:[#allocation8 + $0x10] sm:$0xff] %vm354_vm1, %v526_v50  ;;  %540 = vrot.lane.b32.xlu0 %v526_v50, %s1373_s2 }
 0x1f8   :  { %v1177_v51 = vpop.f32.mrb[6].mxu1 }
 0x1f9   :  { %546 = vrot.lane.b32.xlu1 %v1170_v49, %s1373_s2  ;;  %629 = vst.msk [vmem:[#allocation9 + $0x48] sm:$0xff] %vm354_vm1, %v1177_v51  ;;  %v617_v52 = vpop.f32.mrb[7].mxu1 }
 0x1fa   :  { %627 = vst.msk [vmem:[#allocation8 + $0x18] sm:$0xff] %vm354_vm1, %v617_v52  ;;  %631 = vrot.lane.b32.xlu0 %v617_v52, %s1373_s2 }
 0x1fc   :  { %v1184_v53 = vpop.f32.mrb[8].mxu1 }
 0x1fd   :  { %637 = vrot.lane.b32.xlu1 %v1177_v51, %s1373_s2  ;;  %720 = vst.msk [vmem:[#allocation9 + $0x60] sm:$0xff] %vm354_vm1, %v1184_v53  ;;  %v708_v54 = vpop.f32.mrb[9].mxu1 }
 0x1fe   :  { %718 = vst.msk [vmem:[#allocation8 + $0x20] sm:$0xff] %vm354_vm1, %v708_v54  ;;  %722 = vrot.lane.b32.xlu0 %v708_v54, %s1373_s2 }
 0x200   :  { %v1191_v55 = vpop.f32.mrb[10].mxu1 }
 0x201   :  { %728 = vrot.lane.b32.xlu1 %v1184_v53, %s1373_s2  ;;  %811 = vst.msk [vmem:[#allocation9 + $0x78] sm:$0xff] %vm354_vm1, %v1191_v55  ;;  %v799_v56 = vpop.f32.mrb[11].mxu1 }
 0x202   :  { %809 = vst.msk [vmem:[#allocation8 + $0x28] sm:$0xff] %vm354_vm1, %v799_v56  ;;  %813 = vrot.lane.b32.xlu0 %v799_v56, %s1373_s2 }
 0x204   :  { %v1198_v57 = vpop.f32.mrb[12].mxu1 }
 0x205   :  { %819 = vrot.lane.b32.xlu1 %v1191_v55, %s1373_s2  ;;  %902 = vst.msk [vmem:[#allocation9 + $0x90] sm:$0xff] %vm354_vm1, %v1198_v57  ;;  %v890_v58 = vpop.f32.mrb[13].mxu1 }
 0x206   :  { %900 = vst.msk [vmem:[#allocation8 + $0x30] sm:$0xff] %vm354_vm1, %v890_v58  ;;  %904 = vrot.lane.b32.xlu0 %v890_v58, %s1373_s2 }
 0x208   :  { %v1205_v59 = vpop.f32.mrb[14].mxu1 }
 0x209   :  { %910 = vrot.lane.b32.xlu1 %v1198_v57, %s1373_s2  ;;  %993 = vst.msk [vmem:[#allocation9 + $0xa8] sm:$0xff] %vm354_vm1, %v1205_v59  ;;  %v981_v60 = vpop.f32.mrb[15].mxu1 }
 0x20a   :  { %991 = vst.msk [vmem:[#allocation8 + $0x38] sm:$0xff] %vm354_vm1, %v981_v60  ;;  %995 = vrot.lane.b32.xlu0 %v981_v60, %s1373_s2 }
 0x20b   :  { %1327 = shalt.err (!%p1324_p0)
}
 0x20c   :  { %s1328_s6 = scalar_lea.hbm %s1566_s3, 1024 }
 0x20d   :  { %p1329_p1 = scmp.ne.s32.totalorder %s1566_s3, %s1328_s6  ;;  %p1332_p2 = scmp.lt.u32.totalorder %s1328_s6, %s1566_s3 }
 0x20f   :  { %p1334_p3 = pnand %p1332_p2, %p1329_p1 }
 0x211   :  { %1337 = shalt.err (!%p1334_p3)
}
 0x212   :  { %1017 = dma.vmem_to_hbm [thread:$0]  %s1012_s26, 1024, %s1566_s3, [#allocation4], %s1370_s27, %s1370_s27, %s1371_s28  }
 0x213   :  { %1001 = vrot.lane.b32.xlu1 %v1205_v59, %s1373_s2  ;;  %s1375_s3 = smov [#allocation9]  }
 0x214   :  { %s1023_s1 = sshll.u32 %s1375_s3, 4  ;;  %s1024_s1 = int_to_ptr.vmem [resolvable:$true] %s1023_s1 }
 0x215   :  { %s1338_s13 = scalar_lea.vmem %s1024_s1, 3072  ;;  %p1343_p5 = scmp.lt.s32.totalorder %s1024_s1, %s1024_s1 }
 0x216   :  { %p1339_p4 = scmp.ne.s32.totalorder %s1024_s1, %s1338_s13  ;;  %p1344_p6 = scmp.lt.s32.totalorder %s1338_s13, %s1338_s13 }
 0x218   :  { %p1345_p7 = por %p1344_p6, %p1343_p5 }
 0x21a   :  { %p1346_p8 = pnand %p1345_p7, %p1339_p4 }
 0x25f   :  { %v365_v61 = vpop.permute.xlu0 %364 }
 0x260   :  { %368 = vst.msk [vmem:[#allocation9 + $0x10] sm:$0xff] %vm354_vm1, %v365_v61 }
 0x263   :  { %v359_v62 = vpop.permute.xlu0 %358  ;;  %v456_v63 = vpop.permute.xlu1 %455 }
 0x264   :  { %362 = vst.msk [vmem:[#allocation9 + $0x8] sm:$0xff] %vm354_vm1, %v359_v62  ;;  %459 = vst.msk [vmem:[#allocation9 + $0x28] sm:$0xff] %vm354_vm1, %v456_v63 }
 0x267   :  { %v450_v0 = vpop.permute.xlu1 %449 }
 0x268   :  { %453 = vst.msk [vmem:[#allocation9 + $0x20] sm:$0xff] %vm354_vm1, %v450_v0  ;;  %v541_v1 = vpop.permute.xlu0 %540 }
 0x269   :  { %544 = vst.msk [vmem:[#allocation9 + $0x38] sm:$0xff] %vm354_vm1, %v541_v1 }
 0x26b   :  { %v547_v2 = vpop.permute.xlu1 %546 }
 0x26c   :  { %550 = vst.msk [vmem:[#allocation9 + $0x40] sm:$0xff] %vm354_vm1, %v547_v2  ;;  %v632_v3 = vpop.permute.xlu0 %631 }
 0x26d   :  { %635 = vst.msk [vmem:[#allocation9 + $0x50] sm:$0xff] %vm354_vm1, %v632_v3 }
 0x26f   :  { %v638_v4 = vpop.permute.xlu1 %637 }
 0x270   :  { %641 = vst.msk [vmem:[#allocation9 + $0x58] sm:$0xff] %vm354_vm1, %v638_v4  ;;  %v723_v5 = vpop.permute.xlu0 %722 }
 0x271   :  { %726 = vst.msk [vmem:[#allocation9 + $0x68] sm:$0xff] %vm354_vm1, %v723_v5 }
 0x273   :  { %v729_v6 = vpop.permute.xlu1 %728 }
 0x274   :  { %732 = vst.msk [vmem:[#allocation9 + $0x70] sm:$0xff] %vm354_vm1, %v729_v6  ;;  %v814_v7 = vpop.permute.xlu0 %813 }
 0x275   :  { %817 = vst.msk [vmem:[#allocation9 + $0x80] sm:$0xff] %vm354_vm1, %v814_v7 }
 0x277   :  { %v820_v8 = vpop.permute.xlu1 %819 }
 0x278   :  { %823 = vst.msk [vmem:[#allocation9 + $0x88] sm:$0xff] %vm354_vm1, %v820_v8  ;;  %v905_v9 = vpop.permute.xlu0 %904 }
 0x279   :  { %908 = vst.msk [vmem:[#allocation9 + $0x98] sm:$0xff] %vm354_vm1, %v905_v9 }
 0x27b   :  { %v911_v10 = vpop.permute.xlu1 %910 }
 0x27c   :  { %914 = vst.msk [vmem:[#allocation9 + $0xa0] sm:$0xff] %vm354_vm1, %v911_v10  ;;  %v996_v11 = vpop.permute.xlu0 %995 }
 0x27d   :  { %999 = vst.msk [vmem:[#allocation9 + $0xb0] sm:$0xff] %vm354_vm1, %v996_v11 }
 0x285   :  { %v1002_v12 = vpop.permute.xlu1 %1001 }
 0x286   :  { %1005 = vst.msk [vmem:[#allocation9 + $0xb8] sm:$0xff] %vm354_vm1, %v1002_v12 }
 0x287   :  { %1349 = shalt.err (!%p1346_p8)
}
 0x288   :  { %s1350_s16 = scalar_lea.hbm %s1567_s4, 3072 }
 0x289   :  { %p1351_p9 = scmp.ne.s32.totalorder %s1567_s4, %s1350_s16  ;;  %p1354_p10 = scmp.lt.u32.totalorder %s1350_s16, %s1567_s4 }
 0x28b   :  { %p1356_p11 = pnand %p1354_p10, %p1351_p9 }
 0x28d   :  { %1359 = shalt.err (!%p1356_p11)
}
 0x28e   :  { %1029 = dma.vmem_to_hbm [thread:$0]  %s1024_s1, 3072, %s1567_s4, [#allocation10], %s1370_s27, %s1370_s27, %s1371_s28  }
 0x28f   :  { %1364 = dma.done.wait [#allocation4], 1024  }
 0x290   :  { %1365 = vsyncadd [#allocation4], 4294966272 }
 0x291   :  { %1366 = dma.done.wait [#allocation10], 3072  }
 0x292   :  { %1367 = vsyncadd [#allocation10], 4294964224 }
 0x293   :  { %1036 = vsyncpa [#allocation3], 1 }
 0x294   :  { %1037 = vsyncpa [#allocation6], 1 }
 0x295   :  { %1038 = vsyncpa [#allocation4], 1 }
 0x296   :  { %1039 = vsyncpa [#allocation10], 1 }

</bundles_post_ra>
